<compile_context>
chip_gen: v7x
topology: tpu7x:2x2x1
jax: 0.10.0
libtpu: 0.0.40
codegen_flags: <defaults>
</compile_context>

<pallas_src>
import jax
import jax.numpy as jnp
from jax.experimental import pallas as pl
from jax.experimental.pallas import tpu as pltpu


# ---------------------------------------------------------------------------
# Model dimensions (small, synthetic, consistent with the AutoEncoder MLPs)
# ---------------------------------------------------------------------------
SOL_DIM = 16        # dimensionality of `solution`
HIDDEN = 32         # hidden width of encoder / decoder MLPs
ENC_DIM = 32        # encoder output width (the "code")
BATCH = 16          # example batch size (multiple of 8)
LANES = 128         # lane width of every packed slab (one vreg lane tile)
N_LAYERS = 4        # enc.l1, enc.l2, dec.l1, dec.l2
DEC_OFF = ENC_DIM   # lane offset where `decoded` lands in the packed output
MAX_TB = 256        # cap on rows per grid step (keeps VMEM use trivial)


# ---------------------------------------------------------------------------
# Pallas kernel: fused encoder + decoder on one (TB, ...) batch tile
# ---------------------------------------------------------------------------
def autoencoder_kernel(x_ref, w_ref, b_ref, out_ref):
    # x: (TB, SOL_DIM) raw solution tile (no padding needed).
    x = x_ref[...]

    # --- encoder: Linear(SOL->HID) -> ReLU -> Linear(HID->ENC) ---
    w0 = w_ref[0, :SOL_DIM, :]                                  # (SOL_DIM, 128)
    h = jnp.dot(x, w0, preferred_element_type=jnp.float32) + b_ref[0:1, :]
    h = jnp.maximum(h, 0.0)
    enc = jnp.dot(h, w_ref[1], preferred_element_type=jnp.float32) + b_ref[1:2, :]
    # enc: lanes [0, ENC_DIM) hold `encoded`; lanes [ENC_DIM, 128) are exactly 0.

    # --- decoder: Linear(ENC->HID) -> ReLU -> Linear(HID->SOL) ---
    hd = jnp.dot(enc, w_ref[2], preferred_element_type=jnp.float32) + b_ref[2:3, :]
    hd = jnp.maximum(hd, 0.0)
    dec = jnp.dot(hd, w_ref[3], preferred_element_type=jnp.float32) + b_ref[3:4, :]
    # dec: the output weight block is pre-shifted at pack time, so `decoded`
    # sits in lanes [DEC_OFF, DEC_OFF+SOL_DIM) and everything else is exactly 0.

    # Disjoint zero-padded layouts -> one add packs both outputs into a single
    # lane-dense slab; one full-width unmasked store.
    out_ref[...] = enc + dec


# ---------------------------------------------------------------------------
# Parameter packing (done ONCE, outside jit): zero-embed everything into
# 128-lane slabs so the kernel never slices along lanes.
# ---------------------------------------------------------------------------
def pack_params(params):
    we1, be1, we2, be2, wd1, bd1, wd2, bd2 = params
    w = jnp.zeros((N_LAYERS, LANES, LANES), jnp.float32)
    b = jnp.zeros((8, LANES), jnp.float32)            # 8 rows: sublane aligned

    w = w.at[0, :SOL_DIM, :HIDDEN].set(we1)           # encoder layer 1
    b = b.at[0, :HIDDEN].set(be1)
    w = w.at[1, :HIDDEN, :ENC_DIM].set(we2)           # encoder layer 2
    b = b.at[1, :ENC_DIM].set(be2)
    w = w.at[2, :ENC_DIM, :HIDDEN].set(wd1)           # decoder layer 1
    b = b.at[2, :HIDDEN].set(bd1)
    # Decoder output layer pre-shifted to lanes [DEC_OFF, DEC_OFF+SOL_DIM) so
    # the packed-output layout is produced by the matmul itself.
    w = w.at[3, :HIDDEN, DEC_OFF:DEC_OFF + SOL_DIM].set(wd2)
    b = b.at[3, DEC_OFF:DEC_OFF + SOL_DIM].set(bd2)
    return w, b


def _pick_batch_tile(bsz):
    # Largest sublane-aligned divisor of the batch, capped at MAX_TB rows.
    tb = min(bsz, MAX_TB)
    while bsz % tb:
        tb -= 8
    return tb


# ---------------------------------------------------------------------------
# Wrapper
# ---------------------------------------------------------------------------
@jax.jit
def autoencoder_forward(solution, w_packed, b_packed):
    bsz = solution.shape[0]
    assert bsz % 8 == 0, "batch must be a multiple of the 8-row sublane tile"
    tb = _pick_batch_tile(bsz)

    out = pl.pallas_call(
        autoencoder_kernel,
        out_shape=jax.ShapeDtypeStruct((bsz, LANES), jnp.float32),
        grid_spec=pltpu.PrefetchScalarGridSpec(
            num_scalar_prefetch=0,
            grid=(bsz // tb,),
            in_specs=[
                pl.BlockSpec((tb, SOL_DIM), lambda i: (i, 0)),               # x tile
                pl.BlockSpec((N_LAYERS, LANES, LANES), lambda i: (0, 0, 0)), # weights (VMEM-resident)
                pl.BlockSpec((8, LANES), lambda i: (0, 0)),                  # biases (VMEM-resident)
            ],
            out_specs=pl.BlockSpec((tb, LANES), lambda i: (i, 0)),
        ),
        compiler_params=pltpu.CompilerParams(
            dimension_semantics=("parallel",)),
    )(solution, w_packed, b_packed)

    # Slice the packed lane-dense output slab back into the two logical outputs.
    encoded = out[:, :ENC_DIM]
    decoded = out[:, DEC_OFF:DEC_OFF + SOL_DIM]
    return encoded, decoded


# ---------------------------------------------------------------------------
# Deterministic parameter init (PyTorch-Linear-style uniform, weights [in,out])
# ---------------------------------------------------------------------------
def init_params(key):
    def lin(k, fan_in, fan_out):
        kw, kb = jax.random.split(k)
        scale = 1.0 / jnp.sqrt(jnp.float32(fan_in))
        w = jax.random.uniform(kw, (fan_in, fan_out), jnp.float32, -scale, scale)
        b = jax.random.uniform(kb, (fan_out,), jnp.float32, -scale, scale)
        return w, b

    keys = jax.random.split(key, 4)
    we1, be1 = lin(keys[0], SOL_DIM, HIDDEN)   # encoder layer 1
    we2, be2 = lin(keys[1], HIDDEN, ENC_DIM)   # encoder layer 2
    wd1, bd1 = lin(keys[2], ENC_DIM, HIDDEN)   # decoder layer 1
    wd2, bd2 = lin(keys[3], HIDDEN, SOL_DIM)   # decoder layer 2
    return (we1, be1, we2, be2, wd1, bd1, wd2, bd2)


# ---------------------------------------------------------------------------
# Pure-JAX reference (AutoEncoder.forward semantics)
# ---------------------------------------------------------------------------
def autoencoder_reference(solution, params):
    we1, be1, we2, be2, wd1, bd1, wd2, bd2 = params
    h = jnp.maximum(solution @ we1 + be1, 0.0)
    encoded = h @ we2 + be2
    hd = jnp.maximum(encoded @ wd1 + bd1, 0.0)
    decoded = hd @ wd2 + bd2
    return encoded, decoded


if __name__ == "__main__":
    key = jax.random.PRNGKey(0)
    k_sol, k_params = jax.random.split(key)

    solution = jax.random.normal(k_sol, (BATCH, SOL_DIM), jnp.float32)
    params = init_params(k_params)
    w_packed, b_packed = pack_params(params)   # built once, outside jit

    encoded, decoded = jax.block_until_ready(
        autoencoder_forward(solution, w_packed, b_packed))

    enc_ref, dec_ref = autoencoder_reference(solution, params)
    assert encoded.shape == enc_ref.shape and decoded.shape == dec_ref.shape
    assert jnp.allclose(encoded, enc_ref, atol=1e-4, rtol=1e-4), "encoded mismatch"
    assert jnp.allclose(decoded, dec_ref, atol=1e-4, rtol=1e-4), "decoded mismatch"

    print("KERNEL_OK")
</pallas_src>

<mosaic_0001>
module attributes {stable_mosaic.version = 11 : i64} {
  func.func @autoencoder_kernel(%arg0: i32, %arg1: memref<16x16xf32, #tpu.memory_space<vmem>>, %arg2: memref<4x128x128xf32, #tpu.memory_space<vmem>>, %arg3: memref<8x128xf32, #tpu.memory_space<vmem>>, %arg4: memref<16x128xf32, #tpu.memory_space<vmem>>) attributes {dimension_semantics = [#tpu.dimension_semantics<parallel>], iteration_bounds = array<i64: 1>, scalar_prefetch = 0 : i64, scratch_operands = 0 : i64, tpu.core_type = #tpu.core_type<tc>, window_params = [{transform_indices = @transform_0, window_bounds = array<i64: 16, 16>}, {pipeline_mode = #tpu.pipeline_mode<synchronous>, transform_indices = @transform_1, window_bounds = array<i64: 4, 128, 128>}, {pipeline_mode = #tpu.pipeline_mode<synchronous>, transform_indices = @transform_2, window_bounds = array<i64: 8, 128>}, {transform_indices = @transform_3, window_bounds = array<i64: 16, 128>}]} {
    %c0 = arith.constant 0 : index
    %c0_0 = arith.constant 0 : index
    %0 = vector.load %arg1[%c0, %c0_0] : memref<16x16xf32, #tpu.memory_space<vmem>>, vector<16x16xf32>
    %c0_1 = arith.constant 0 : index
    %c0_2 = arith.constant 0 : index
    %c0_3 = arith.constant 0 : index
    %1 = vector.load %arg2[%c0_1, %c0_2, %c0_3] : memref<4x128x128xf32, #tpu.memory_space<vmem>>, vector<1x16x128xf32>
    %2 = vector.shape_cast %1 : vector<1x16x128xf32> to vector<16x128xf32>
    %cst = arith.constant dense<0.000000e+00> : vector<16x128xf32>
    %3 = tpu.matmul %0, %2, %cst {dimension_numbers = #tpu.dot_dimension_numbers<[1], [0], [0], [1], [0, 0, 1, 1], [], []>} : vector<16x16xf32>, vector<16x128xf32>, vector<16x128xf32> -> vector<16x128xf32>
    %c0_4 = arith.constant 0 : index
    %c0_5 = arith.constant 0 : index
    %4 = vector.load %arg3[%c0_4, %c0_5] : memref<8x128xf32, #tpu.memory_space<vmem>>, vector<1x128xf32>
    %5 = vector.broadcast %4 : vector<1x128xf32> to vector<16x128xf32>
    %6 = arith.addf %3, %5 : vector<16x128xf32>
    %cst_6 = arith.constant 0.000000e+00 : f32
    %7 = vector.broadcast %cst_6 : f32 to vector<16x128xf32>
    %8 = arith.maximumf %6, %7 : vector<16x128xf32>
    %c1 = arith.constant 1 : index
    %c0_7 = arith.constant 0 : index
    %c0_8 = arith.constant 0 : index
    %9 = vector.load %arg2[%c1, %c0_7, %c0_8] : memref<4x128x128xf32, #tpu.memory_space<vmem>>, vector<1x128x128xf32>
    %10 = vector.shape_cast %9 : vector<1x128x128xf32> to vector<128x128xf32>
    %cst_9 = arith.constant dense<0.000000e+00> : vector<16x128xf32>
    %11 = tpu.matmul %8, %10, %cst_9 {dimension_numbers = #tpu.dot_dimension_numbers<[1], [0], [0], [1], [0, 0, 1, 1], [], []>} : vector<16x128xf32>, vector<128x128xf32>, vector<16x128xf32> -> vector<16x128xf32>
    %c1_10 = arith.constant 1 : index
    %c0_11 = arith.constant 0 : index
    %12 = vector.load %arg3[%c1_10, %c0_11] : memref<8x128xf32, #tpu.memory_space<vmem>>, vector<1x128xf32>
    %13 = vector.broadcast %12 : vector<1x128xf32> to vector<16x128xf32>
    %14 = arith.addf %11, %13 : vector<16x128xf32>
    %c2 = arith.constant 2 : index
    %c0_12 = arith.constant 0 : index
    %c0_13 = arith.constant 0 : index
    %15 = vector.load %arg2[%c2, %c0_12, %c0_13] : memref<4x128x128xf32, #tpu.memory_space<vmem>>, vector<1x128x128xf32>
    %16 = vector.shape_cast %15 : vector<1x128x128xf32> to vector<128x128xf32>
    %cst_14 = arith.constant dense<0.000000e+00> : vector<16x128xf32>
    %17 = tpu.matmul %14, %16, %cst_14 {dimension_numbers = #tpu.dot_dimension_numbers<[1], [0], [0], [1], [0, 0, 1, 1], [], []>} : vector<16x128xf32>, vector<128x128xf32>, vector<16x128xf32> -> vector<16x128xf32>
    %c2_15 = arith.constant 2 : index
    %c0_16 = arith.constant 0 : index
    %18 = vector.load %arg3[%c2_15, %c0_16] : memref<8x128xf32, #tpu.memory_space<vmem>>, vector<1x128xf32>
    %19 = vector.broadcast %18 : vector<1x128xf32> to vector<16x128xf32>
    %20 = arith.addf %17, %19 : vector<16x128xf32>
    %cst_17 = arith.constant 0.000000e+00 : f32
    %21 = vector.broadcast %cst_17 : f32 to vector<16x128xf32>
    %22 = arith.maximumf %20, %21 : vector<16x128xf32>
    %c3 = arith.constant 3 : index
    %c0_18 = arith.constant 0 : index
    %c0_19 = arith.constant 0 : index
    %23 = vector.load %arg2[%c3, %c0_18, %c0_19] : memref<4x128x128xf32, #tpu.memory_space<vmem>>, vector<1x128x128xf32>
    %24 = vector.shape_cast %23 : vector<1x128x128xf32> to vector<128x128xf32>
    %cst_20 = arith.constant dense<0.000000e+00> : vector<16x128xf32>
    %25 = tpu.matmul %22, %24, %cst_20 {dimension_numbers = #tpu.dot_dimension_numbers<[1], [0], [0], [1], [0, 0, 1, 1], [], []>} : vector<16x128xf32>, vector<128x128xf32>, vector<16x128xf32> -> vector<16x128xf32>
    %c3_21 = arith.constant 3 : index
    %c0_22 = arith.constant 0 : index
    %26 = vector.load %arg3[%c3_21, %c0_22] : memref<8x128xf32, #tpu.memory_space<vmem>>, vector<1x128xf32>
    %27 = vector.broadcast %26 : vector<1x128xf32> to vector<16x128xf32>
    %28 = arith.addf %25, %27 : vector<16x128xf32>
    %29 = arith.addf %14, %28 : vector<16x128xf32>
    %c0_23 = arith.constant 0 : index
    %c0_24 = arith.constant 0 : index
    %30 = vector.load %arg4[%c0_23, %c0_24] : memref<16x128xf32, #tpu.memory_space<vmem>>, vector<16x128xf32>
    tpu.vector_store %arg4[%c0_23, %c0_24], %29 {strides = array<i32>} : memref<16x128xf32, #tpu.memory_space<vmem>>, vector<16x128xf32>,
    return
  }
  func.func @transform_0(%arg0: i32) -> (i32, i32) {
    %c0_i32 = arith.constant 0 : i32
    %c0_i32_0 = arith.constant 0 : i32
    return %arg0, %c0_i32 : i32, i32
  }
  func.func @transform_1(%arg0: i32) -> (i32, i32, i32) {
    %c0_i32 = arith.constant 0 : i32
    %c0_i32_0 = arith.constant 0 : i32
    %c0_i32_1 = arith.constant 0 : i32
    %c0_i32_2 = arith.constant 0 : i32
    return %c0_i32, %c0_i32_0, %c0_i32_1 : i32, i32, i32
  }
  func.func @transform_2(%arg0: i32) -> (i32, i32) {
    %c0_i32 = arith.constant 0 : i32
    %c0_i32_0 = arith.constant 0 : i32
    %c0_i32_1 = arith.constant 0 : i32
    return %c0_i32, %c0_i32_0 : i32, i32
  }
  func.func @transform_3(%arg0: i32) -> (i32, i32) {
    %c0_i32 = arith.constant 0 : i32
    %c0_i32_0 = arith.constant 0 : i32
    return %arg0, %c0_i32 : i32, i32
  }
}

</mosaic_0001>

<bundles_post_ra>
// kernel: autoencoder_forward.1
= control target key start
LH: loop header
LB: loop body
LE: loop exit
PB: predicated region body
PF: predicated region fallthrough
CT: control target
= control target key end

     0   :  { %8 = vsyncpa [#allocation3], 0  ;;  %s876_s0 = inlined_call_operand.hbm [shape: f32[16,16], index: 0, kind: input, shape index: {}]   ;;  %s877_s1 = inlined_call_operand.hbm [shape: f32[4,128,128], index: 1, kind: input, shape index: {}]   ;;  %s878_s2 = inlined_call_operand.hbm [shape: f32[8,128], index: 2, kind: input, shape index: {}]   ;;  %s879_s3 = inlined_call_operand.vmem [shape: f32[16,128], index: 3, kind: output, shape index: {}]  }
   0x1   :  { %9 = vsyncpa [#allocation5], 0  ;;  %s800_s12 = smov [#allocation4]   ;;  %s801_s14 = smov [#allocation2]  }
   0x2   :  { %s27_s13 = sshll.u32 %s800_s12, 4  ;;  %s15_s15 = sshll.u32 %s801_s14, 4  ;;  %s28_s13 = int_to_ptr.vmem [resolvable:$true] %s27_s13  ;;  %s825_s15 = int_to_ptr.vmem [resolvable:$true] %s15_s15 }
   0x3   :  { %s730_s18 = scalar_lea.hbm %s877_s1, 8192 }
   0x4   :  { %p731_p0 = scmp.ne.s32.totalorder %s877_s1, %s730_s18  ;;  %p734_p1 = scmp.lt.u32.totalorder %s730_s18, %s877_s1 }
   0x6   :  { %p736_p2 = pnand %p734_p1, %p731_p0 }
   0x8   :  { %739 = shalt.err (!%p736_p2)
}
   0x9   :  { %s740_s23 = scalar_lea.vmem %s28_s13, 8192  ;;  %p745_p4 = scmp.lt.s32.totalorder %s28_s13, %s28_s13 }
   0xa   :  { %p741_p3 = scmp.ne.s32.totalorder %s28_s13, %s740_s23  ;;  %p746_p5 = scmp.lt.s32.totalorder %s740_s23, %s740_s23 }
   0xc   :  { %p747_p6 = por %p746_p5, %p745_p4 }
   0xe   :  { %p748_p7 = pnand %p747_p6, %p741_p3 }
  0x10   :  { %751 = shalt.err (!%p748_p7)
}
  0x11   :  { %s802_s24 = smov 128   ;;  %s803_s25 = smov 8  }
  0x12   :  { %33 = dma.hbm_to_vmem [thread:$0]  %s877_s1, 8192, %s28_s13, [#allocation5], %s802_s24, %s802_s24, %s803_s25  }
  0x13   :  { %s752_s30 = scalar_lea.hbm %s876_s0, 256 }
  0x14   :  { %p753_p8 = scmp.ne.s32.totalorder %s876_s0, %s752_s30  ;;  %p756_p9 = scmp.lt.u32.totalorder %s752_s30, %s876_s0 }
  0x16   :  { %p758_p10 = pnand %p756_p9, %p753_p8 }
  0x18   :  { %761 = shalt.err (!%p758_p10)
}
  0x19   :  { %s762_s8 = scalar_lea.vmem %s825_s15, 256  ;;  %p767_p12 = scmp.lt.s32.totalorder %s825_s15, %s825_s15 }
  0x1a   :  { %p763_p11 = scmp.ne.s32.totalorder %s825_s15, %s762_s8  ;;  %p768_p13 = scmp.lt.s32.totalorder %s762_s8, %s762_s8 }
  0x1c   :  { %p769_p0 = por %p768_p13, %p767_p12 }
  0x1e   :  { %p770_p1 = pnand %p769_p0, %p763_p11 }
  0x20   :  { %773 = shalt.err (!%p770_p1)
}
  0x21   :  { %21 = dma.hbm_to_vmem [thread:$0]  %s876_s0, 256, %s825_s15, [#allocation3], %s802_s24, %s802_s24, %s803_s25  }
  0x22   :  { %s804_s10 = smov [#allocation6]   ;;  %s774_s14 = scalar_lea.hbm %s878_s2, 128 }
  0x23   :  { %s40_s11 = sshll.u32 %s804_s10, 4  ;;  %p775_p2 = scmp.ne.s32.totalorder %s878_s2, %s774_s14  ;;  %s41_s11 = int_to_ptr.vmem [resolvable:$true] %s40_s11 }
  0x24   :  { %p778_p3 = scmp.lt.u32.totalorder %s774_s14, %s878_s2 }
  0x26   :  { %p780_p4 = pnand %p778_p3, %p775_p2 }
  0x28   :  { %783 = shalt.err (!%p780_p4)
}
  0x29   :  { %s784_s20 = scalar_lea.vmem %s41_s11, 128  ;;  %p789_p6 = scmp.lt.s32.totalorder %s41_s11, %s41_s11 }
  0x2a   :  { %p785_p5 = scmp.ne.s32.totalorder %s41_s11, %s784_s20  ;;  %p790_p7 = scmp.lt.s32.totalorder %s784_s20, %s784_s20 }
  0x2c   :  { %p791_p8 = por %p790_p7, %p789_p6 }
  0x2e   :  { %p792_p9 = pnand %p791_p8, %p785_p5 }
  0x30   :  { %795 = shalt.err (!%p792_p9)
}
  0x31   :  { %43 = dma.hbm_to_vmem [thread:$0]  %s878_s2, 128, %s41_s11, [#allocation5]  }
  0x32   :  { %796 = dma.done.wait [#allocation3], 256  }
  0x33   :  { %797 = vsyncadd [#allocation3], 4294967040 }
  0x34   :  { %798 = dma.done.wait [#allocation5], 8320  }
  0x35   :  { %799 = vsyncadd [#allocation5], 4294958976  ;;  %vm62_vm0 = vcmask 130048   ;;  %v55_v0 = vld [vmem:[#allocation4] sm:$0xff]  ;;  %v56_v1 = vld [vmem:[#allocation4 + $0x8] sm:$0xff] }
  0x36   :  { %v53_v2 = vld [vmem:[#allocation2] sm:$0xff]  ;;  %v625_v3 = vpack.c.bf16 %v56_v1, %v55_v0  ;;  %v147_v4 = vld [vmem:[#allocation4 + $0x80] sm:$0xff]  ;;  %v148_v5 = vld [vmem:[#allocation4 + $0x88] sm:$0xff] }
  0x37   :  { %517 = vmatprep.mubr.msk.f32.mxu0 %vm62_vm0, %v53_v2  ;;  %v629_v6 = vpack.c.bf16 %v148_v5, %v147_v4  ;;  %v149_v7 = vld [vmem:[#allocation4 + $0x90] sm:$0xff]  ;;  %v150_v8 = vld [vmem:[#allocation4 + $0x98] sm:$0xff]  ;;  %v151_v10 = vld [vmem:[#allocation4 + $0xa0] sm:$0xff] }
  0x38   :  { %626 = vmatprep.subr.bf16.mxu0 %v625_v3  ;;  %v633_v9 = vpack.c.bf16 %v150_v8, %v149_v7  ;;  %v152_v11 = vld [vmem:[#allocation4 + $0xa8] sm:$0xff]  ;;  %v54_v12 = vld [vmem:[#allocation2 + $0x8] sm:$0xff]  ;;  %v153_v14 = vld [vmem:[#allocation4 + $0xb0] sm:$0xff] }
  0x39   :  { %628 = vmatpush3.bf16.msra.mxu0 %v625_v3  ;;  %630 = vmatprep.subr.bf16.mxu1 %v629_v6  ;;  %v637_v13 = vpack.c.bf16 %v152_v11, %v151_v10  ;;  %v154_v15 = vld [vmem:[#allocation4 + $0xb8] sm:$0xff]  ;;  %v155_v17 = vld [vmem:[#allocation4 + $0xc0] sm:$0xff]  ;;  %v156_v18 = vld [vmem:[#allocation4 + $0xc8] sm:$0xff] }
  0x3a   :  { %632 = vmatpush3.bf16.msra.mxu1 %v629_v6  ;;  %v641_v16 = vpack.c.bf16 %v154_v15, %v153_v14  ;;  %v645_v19 = vpack.c.bf16 %v156_v18, %v155_v17  ;;  %v157_v20 = vld [vmem:[#allocation4 + $0xd0] sm:$0xff]  ;;  %v158_v21 = vld [vmem:[#allocation4 + $0xd8] sm:$0xff]  ;;  %v159_v23 = vld [vmem:[#allocation4 + $0xe0] sm:$0xff] }
  0x3b   :  { %634 = vmatprep.subr.bf16.mxu1 %v633_v9  ;;  %v649_v22 = vpack.c.bf16 %v158_v21, %v157_v20  ;;  %v160_v24 = vld [vmem:[#allocation4 + $0xe8] sm:$0xff]  ;;  %v161_v26 = vld [vmem:[#allocation4 + $0xf0] sm:$0xff]  ;;  %v162_v27 = vld [vmem:[#allocation4 + $0xf8] sm:$0xff] }
  0x3c   :  { %518 = vmatmul.mubr.msk.f32.vlgmr.msra.gmra.mrb[0].mxu0 %vm62_vm0, %v54_v12  ;;  %v653_v25 = vpack.c.bf16 %v160_v24, %v159_v23  ;;  %v657_v28 = vpack.c.bf16 %v162_v27, %v161_v26  ;;  %v244_v29 = vld [vmem:[#allocation4 + $0x100] sm:$0xff]  ;;  %v245_v30 = vld [vmem:[#allocation4 + $0x108] sm:$0xff]  ;;  %v246_v31 = vld [vmem:[#allocation4 + $0x110] sm:$0xff] }
  0x3d   :  { %v661_v32 = vpack.c.bf16 %v245_v30, %v244_v29  ;;  %v247_v33 = vld [vmem:[#allocation4 + $0x118] sm:$0xff]  ;;  %v248_v35 = vld [vmem:[#allocation4 + $0x120] sm:$0xff]  ;;  %v249_v36 = vld [vmem:[#allocation4 + $0x128] sm:$0xff] }
  0x3e   :  { %636 = vmatpush3.bf16.msra.mxu1 %v633_v9  ;;  %v665_v34 = vpack.c.bf16 %v247_v33, %v246_v31  ;;  %v669_v37 = vpack.c.bf16 %v249_v36, %v248_v35  ;;  %v250_v38 = vld [vmem:[#allocation4 + $0x130] sm:$0xff]  ;;  %v251_v39 = vld [vmem:[#allocation4 + $0x138] sm:$0xff]  ;;  %v252_v41 = vld [vmem:[#allocation4 + $0x140] sm:$0xff] }
  0x3f   :  { %638 = vmatprep.subr.bf16.mxu1 %v637_v13  ;;  %662 = vmatprep.subr.bf16.mxu0 %v661_v32  ;;  %v673_v40 = vpack.c.bf16 %v251_v39, %v250_v38  ;;  %v253_v42 = vld [vmem:[#allocation4 + $0x148] sm:$0xff]  ;;  %v254_v44 = vld [vmem:[#allocation4 + $0x150] sm:$0xff]  ;;  %v255_v45 = vld [vmem:[#allocation4 + $0x158] sm:$0xff] }
  0x40   :  { %664 = vmatpush3.bf16.msra.mxu0 %v661_v32  ;;  %v677_v43 = vpack.c.bf16 %v253_v42, %v252_v41  ;;  %v681_v46 = vpack.c.bf16 %v255_v45, %v254_v44  ;;  %v256_v47 = vld [vmem:[#allocation4 + $0x160] sm:$0xff]  ;;  %v257_v48 = vld [vmem:[#allocation4 + $0x168] sm:$0xff]  ;;  %v258_v57 = vld [vmem:[#allocation4 + $0x170] sm:$0xff] }
  0x41   :  { %666 = vmatprep.subr.bf16.mxu0 %v665_v34  ;;  %v685_v49 = vpack.c.bf16 %v257_v48, %v256_v47  ;;  %v449_v50 = vld [vmem:[#allocation6] ss:$0 sm:$0xff]  ;;  %v259_v58 = vld [vmem:[#allocation4 + $0x178] sm:$0xff]  ;;  %v344_v61 = vld [vmem:[#allocation4 + $0x188] sm:$0xff] }
  0x42   :  { %640 = vmatpush3.bf16.msra.mxu1 %v637_v13  ;;  %v689_v59 = vpack.c.bf16 %v259_v58, %v258_v57  ;;  %v343_v60 = vld [vmem:[#allocation4 + $0x180] sm:$0xff]  ;;  %v345_v62 = vld [vmem:[#allocation4 + $0x190] sm:$0xff]  ;;  %v346_v0 = vld [vmem:[#allocation4 + $0x198] sm:$0xff] }
  0x43   :  { %642 = vmatprep.subr.bf16.mxu1 %v641_v16  ;;  %v693_v63 = vpack.c.bf16 %v344_v61, %v343_v60  ;;  %v697_v1 = vpack.c.bf16 %v346_v0, %v345_v62  ;;  %v347_v2 = vld [vmem:[#allocation4 + $0x1a0] sm:$0xff]  ;;  %v348_v3 = vld [vmem:[#allocation4 + $0x1a8] sm:$0xff]  ;;  %v349_v5 = vld [vmem:[#allocation4 + $0x1b0] sm:$0xff] }
  0x44   :  { %668 = vmatpush3.bf16.msra.mxu0 %v665_v34  ;;  %v701_v4 = vpack.c.bf16 %v348_v3, %v347_v2  ;;  %v350_v6 = vld [vmem:[#allocation4 + $0x1b8] sm:$0xff]  ;;  %v351_v8 = vld [vmem:[#allocation4 + $0x1c0] sm:$0xff]  ;;  %v352_v9 = vld [vmem:[#allocation4 + $0x1c8] sm:$0xff] }
  0x45   :  { %670 = vmatprep.subr.bf16.mxu0 %v669_v37  ;;  %v705_v7 = vpack.c.bf16 %v350_v6, %v349_v5  ;;  %v709_v10 = vpack.c.bf16 %v352_v9, %v351_v8  ;;  %v353_v11 = vld [vmem:[#allocation4 + $0x1d0] sm:$0xff]  ;;  %v354_v12 = vld [vmem:[#allocation4 + $0x1d8] sm:$0xff]  ;;  %v355_v14 = vld [vmem:[#allocation4 + $0x1e0] sm:$0xff] }
  0x46   :  { %644 = vmatpush3.bf16.msra.mxu1 %v641_v16  ;;  %v713_v13 = vpack.c.bf16 %v354_v12, %v353_v11  ;;  %v356_v15 = vld [vmem:[#allocation4 + $0x1e8] sm:$0xff]  ;;  %v452_v17 = vld [vmem:[#allocation6 + $0x1] ss:$0 sm:$0xff]  ;;  %v358_v23 = vld [vmem:[#allocation4 + $0x1f8] sm:$0xff] }
  0x47   :  { %646 = vmatprep.subr.bf16.mxu1 %v645_v19  ;;  %v717_v16 = vpack.c.bf16 %v356_v15, %v355_v14  ;;  %v454_v32 = vld [vmem:[#allocation6 + $0x3] ss:$0 sm:$0xff] }
  0x48   :  { %672 = vmatpush3.bf16.msra.mxu0 %v669_v37 }
  0x49   :  { %674 = vmatprep.subr.bf16.mxu0 %v673_v40 }
  0x4a   :  { %648 = vmatpush3.bf16.msra.mxu1 %v645_v19 }
  0x4b   :  { %650 = vmatprep.subr.bf16.mxu1 %v649_v22 }
  0x4c   :  { %676 = vmatpush3.bf16.msra.mxu0 %v673_v40 }
  0x4d   :  { %678 = vmatprep.subr.bf16.mxu0 %v677_v43 }
  0x4e   :  { %652 = vmatpush3.bf16.msra.mxu1 %v649_v22  ;;  %v357_v22 = vld [vmem:[#allocation4 + $0x1f0] sm:$0xff] }
  0x4f   :  { %654 = vmatprep.subr.bf16.mxu1 %v653_v25  ;;  %v721_v24 = vpack.c.bf16 %v358_v23, %v357_v22 }
  0x50   :  { %680 = vmatpush3.bf16.msra.mxu0 %v677_v43 }
  0x51   :  { %682 = vmatprep.subr.bf16.mxu0 %v681_v46 }
  0x52   :  { %656 = vmatpush3.bf16.msra.mxu1 %v653_v25  ;;  %v453_v25 = vld [vmem:[#allocation6 + $0x2] ss:$0 sm:$0xff] }
  0x53   :  { %658 = vmatprep.subr.bf16.mxu1 %v657_v28 }
  0x54   :  { %684 = vmatpush3.bf16.msra.mxu0 %v681_v46 }
  0x55   :  { %686 = vmatprep.subr.bf16.mxu0 %v685_v49 }
  0x56   :  { %660 = vmatpush3.bf16.msra.mxu1 %v657_v28 }
  0x57   :  { %694 = vmatprep.subr.bf16.mxu1 %v693_v63 }
  0x58   :  { %688 = vmatpush3.bf16.msra.mxu0 %v685_v49 }
  0x59   :  { %690 = vmatprep.subr.bf16.mxu0 %v689_v59 }
  0x5c   :  { %692 = vmatpush3.bf16.msra.mxu0 %v689_v59 }
 0x10f   :  { %v519_v51 = vpop.f32.mrb[0].mxu0 }
 0x110   :  { %v141_v52 = vadd.f32 %v519_v51, %v449_v50  ;;  %v135_v53 = vpop.f32.mrb[1].mxu0 }
 0x111   :  { %v136_v54 = vadd.f32 %v449_v50, %v135_v53 }
 0x112   :  { %v145_v56 = vmax.f32 %v141_v52, 0.0 }
 0x113   :  { %v144_v55 = vmax.f32 %v136_v54, 0.0 }
 0x115   :  { %552 = vmatprep.mubr.f32.mxu1 %v144_v55 }
 0x116   :  { %553 = vmatmul.mubr.f32.vlgmr.msra.gmra.mrb[0].mxu1 %v145_v56 }
 0x117   :  { %696 = vmatpush3.bf16.msra.mxu1 %v693_v63 }
 0x118   :  { %698 = vmatprep.subr.bf16.mxu1 %v697_v1 }
 0x11b   :  { %700 = vmatpush3.bf16.msra.mxu1 %v697_v1 }
 0x11c   :  { %702 = vmatprep.subr.bf16.mxu1 %v701_v4 }
 0x11f   :  { %704 = vmatpush3.bf16.msra.mxu1 %v701_v4 }
 0x120   :  { %706 = vmatprep.subr.bf16.mxu1 %v705_v7 }
 0x123   :  { %708 = vmatpush3.bf16.msra.mxu1 %v705_v7 }
 0x124   :  { %710 = vmatprep.subr.bf16.mxu1 %v709_v10 }
 0x127   :  { %712 = vmatpush3.bf16.msra.mxu1 %v709_v10 }
 0x128   :  { %714 = vmatprep.subr.bf16.mxu1 %v713_v13 }
 0x12b   :  { %716 = vmatpush3.bf16.msra.mxu1 %v713_v13 }
 0x12c   :  { %718 = vmatprep.subr.bf16.mxu1 %v717_v16 }
 0x12f   :  { %720 = vmatpush3.bf16.msra.mxu1 %v717_v16 }
 0x130   :  { %722 = vmatprep.subr.bf16.mxu1 %v721_v24 }
 0x133   :  { %724 = vmatpush3.bf16.msra.mxu1 %v721_v24 }
 0x1e9   :  { %v554_v18 = vpop.f32.mrb[0].mxu1 }
 0x1ea   :  { %v234_v19 = vpop.f32.mrb[1].mxu1  ;;  %v240_v21 = vadd.f32 %v554_v18, %v452_v17 }
 0x1eb   :  { %v235_v20 = vadd.f32 %v452_v17, %v234_v19 }
 0x1ed   :  { %587 = vmatprep.mubr.f32.mxu0 %v235_v20 }
 0x1ee   :  { %588 = vmatmul.mubr.f32.vlgmr.msra.gmra.mrb[2].mxu0 %v240_v21 }
 0x2c1   :  { %v589_v26 = vpop.f32.mrb[2].mxu0 }
 0x2c2   :  { %v337_v27 = vadd.f32 %v589_v26, %v453_v25  ;;  %v331_v28 = vpop.f32.mrb[3].mxu0 }
 0x2c3   :  { %v332_v29 = vadd.f32 %v453_v25, %v331_v28 }
 0x2c4   :  { %v341_v31 = vmax.f32 %v337_v27, 0.0 }
 0x2c5   :  { %v340_v30 = vmax.f32 %v332_v29, 0.0 }
 0x2c7   :  { %622 = vmatprep.mubr.f32.mxu1 %v340_v30 }
 0x2c8   :  { %623 = vmatmul.mubr.f32.vlgmr.msra.gmra.mrb[2].mxu1 %v341_v31 }
 0x39b   :  { %v624_v33 = vpop.f32.mrb[2].mxu1 }
 0x39c   :  { %v436_v34 = vadd.f32 %v624_v33, %v454_v32  ;;  %v430_v35 = vpop.f32.mrb[3].mxu1 }
 0x39d   :  { %v431_v36 = vadd.f32 %v454_v32, %v430_v35 }
 0x39e   :  { %v440_v37 = vadd.f32 %v436_v34, %v240_v21 }
 0x39f   :  { %v439_v38 = vadd.f32 %v431_v36, %v235_v20 }
 0x3a0   :  { %442 = vst [vmem:[%s879_s3 + $0x8] sm:$0xff] %v440_v37 }
 0x3a1   :  { %441 = vst [vmem:[%s879_s3] sm:$0xff] %v439_v38 }
 0x3a2   :  { %447 = vsyncpa [#allocation3], 1 }
 0x3a3   :  { %448 = vsyncpa [#allocation5], 1 }

</bundles_post_ra>
